<compile_context>
chip_gen: v7x
topology: tpu7x:2x2x1
jax: 0.10.0
libtpu: 0.0.40
codegen_flags: <defaults>
</compile_context>

<pallas_src>
import numpy as np
import jax
import jax.numpy as jnp
from jax.experimental import pallas as pl
from jax.experimental.pallas import tpu as pltpu


def _round_up(x, m):
    return ((x + m - 1) // m) * m


# ----------------------------------------------------------------------------
# Fused kernel: heatmap MLP + running per-segment max + action-MLP epilogue.
# ----------------------------------------------------------------------------
def _fused_kernel(off_ref, len_ref,                      # scalar prefetch (SMEM)
                  feat_ref,                              # (tm, D) row tile
                  hw1_ref, hb1_ref, hw2_ref, hb2_ref,    # heatmap MLP (hw2/hb2 pre-permuted)
                  aw1_ref, ab1_ref, aw2_ref, ab2_ref,    # action MLP (block-diagonal over horizon)
                  xt_ref, act_ref,                       # outputs
                  acc_ref):                              # scratch (B, D) running segment max
    i = pl.program_id(0)
    n_steps = pl.num_programs(0)
    tm = feat_ref.shape[0]
    B = acc_ref.shape[0]

    x = feat_ref[...]
    xf = x.astype(jnp.float32)

    # ---- heatmap MLP: Linear -> LeakyReLU(0.02) -> Dropout(0)=id -> Linear ----
    h = jnp.dot(xf, hw1_ref[...], preferred_element_type=jnp.float32) + hb1_ref[...]
    h = jnp.where(h >= 0.0, h, 0.02 * h)
    xt = jnp.dot(h, hw2_ref[...], preferred_element_type=jnp.float32) + hb2_ref[...]
    xt_ref[...] = xt.astype(xt_ref.dtype)

    # ---- running per-segment max over the same row tile (feat is read once) ----
    @pl.when(i == 0)
    def _init():
        acc_ref[...] = jnp.full(acc_ref.shape, -jnp.inf, dtype=acc_ref.dtype)

    row_ids = i * tm + jax.lax.broadcasted_iota(jnp.int32, (tm, 1), 0)
    for b in range(B):                       # B is small and static -> unrolled
        start = off_ref[b]
        end = start + len_ref[b]
        inside = (row_ids >= start) & (row_ids < end)              # (tm, 1)
        seg_max = jnp.max(jnp.where(inside, xf, -jnp.inf),
                          axis=0, keepdims=True)                   # (1, D)
        sl = pl.ds(b, 1)
        acc_ref[sl, :] = jnp.maximum(acc_ref[sl, :], seg_max)

    # ---- epilogue on last step: per-horizon action MLP as block-diag matmuls ----
    @pl.when(i == n_steps - 1)
    def _finish():
        pc = acc_ref[...]                                          # (B, D) f32
        a = jnp.dot(pc, aw1_ref[...], preferred_element_type=jnp.float32) + ab1_ref[...]
        a = jnp.where(a >= 0.0, a, 0.02 * a)
        act = jnp.dot(a, aw2_ref[...], preferred_element_type=jnp.float32) + ab2_ref[...]
        act_ref[...] = act.astype(act_ref.dtype)


# ----------------------------------------------------------------------------
# ActionHead wrapper
# ----------------------------------------------------------------------------
class ActionHeadPallas:
    def __init__(self, hidden_size=32, horizon=8, pos_bins=4,
                 euler_resolution=45, dtype=jnp.float32, seed=0):
        assert hidden_size % horizon == 0
        self.hidden_size = hidden_size
        self.horizon = horizon
        self.pos_bins = pos_bins
        self.euler_bins = 360 // euler_resolution
        self.chunk = hidden_size // horizon
        self.dtype = dtype

        H = horizon
        heat_out = 3 * pos_bins * 2 * H
        act_out = self.euler_bins * 3 + 1
        self.heat_out = heat_out
        self.act_out = act_out

        key = jax.random.PRNGKey(seed)
        ks = jax.random.split(key, 8)
        s = 0.1
        # heatmap_mlp: Linear(hidden, hidden) -> LeakyReLU -> Linear(hidden, heat_out)
        self.hw1 = (s * jax.random.normal(ks[0], (hidden_size, hidden_size))).astype(dtype)
        self.hb1 = (s * jax.random.normal(ks[1], (hidden_size,))).astype(dtype)
        self.hw2 = (s * jax.random.normal(ks[2], (hidden_size, heat_out))).astype(dtype)
        self.hb2 = (s * jax.random.normal(ks[3], (heat_out,))).astype(dtype)
        # action_mlp: Linear(hidden//H, hidden) -> LeakyReLU -> Linear(hidden, act_out)
        self.aw1 = (s * jax.random.normal(ks[4], (self.chunk, hidden_size))).astype(dtype)
        self.ab1 = (s * jax.random.normal(ks[5], (hidden_size,))).astype(dtype)
        self.aw2 = (s * jax.random.normal(ks[6], (hidden_size, act_out))).astype(dtype)
        self.ab2 = (s * jax.random.normal(ks[7], (act_out,))).astype(dtype)

        # ---- bake einops 'n (c h b) -> n h c b' into hw2 / hb2 (host-side, once) ----
        tb = 2 * pos_bins
        perm = np.empty(heat_out, dtype=np.int64)
        idx = 0
        for hh in range(H):
            for cc in range(3):
                for bb in range(tb):
                    perm[idx] = cc * (H * tb) + hh * tb + bb
                    idx += 1
        hw2_np = np.asarray(self.hw2)
        hb2_np = np.asarray(self.hb2)
        self.hw2p = jnp.asarray(hw2_np[:, perm])
        self.hb2p = jnp.asarray(hb2_np[perm]).reshape(1, heat_out)
        self.hb1r = self.hb1.reshape(1, hidden_size)

        # ---- block-diagonal action-MLP weights: H independent MLPs as one matmul ----
        aw1_np = np.asarray(self.aw1)
        ab1_np = np.asarray(self.ab1)
        aw2_np = np.asarray(self.aw2)
        ab2_np = np.asarray(self.ab2)
        W1 = np.zeros((hidden_size, H * hidden_size), dtype=aw1_np.dtype)
        W2 = np.zeros((H * hidden_size, H * act_out), dtype=aw2_np.dtype)
        for j in range(H):
            W1[j * self.chunk:(j + 1) * self.chunk,
               j * hidden_size:(j + 1) * hidden_size] = aw1_np
            W2[j * hidden_size:(j + 1) * hidden_size,
               j * act_out:(j + 1) * act_out] = aw2_np
        self.aw1_bd = jnp.asarray(W1)
        self.ab1_bd = jnp.asarray(np.tile(ab1_np, H)).reshape(1, H * hidden_size)
        self.aw2_bd = jnp.asarray(W2)
        self.ab2_bd = jnp.asarray(np.tile(ab2_np, H)).reshape(1, H * act_out)

    def __call__(self, feat, npoints_in_batch):
        """feat: (npoints, hidden). npoints_in_batch: python list of ints (len B)."""
        N, D = feat.shape
        assert D == self.hidden_size
        H, pb, eb = self.horizon, self.pos_bins, self.euler_bins
        B = len(npoints_in_batch)
        heat_out, act_out = self.heat_out, self.act_out

        # Large row tile (amortize per-step overhead); pad N up instead of asserting.
        tm = min(512, _round_up(N, 8))
        n_pad = _round_up(N, tm)
        feat_p = feat if n_pad == N else jnp.pad(feat, ((0, n_pad - N), (0, 0)))

        # Segment offsets/lengths prefetched into SMEM (padded rows fall in no segment).
        offsets = np.concatenate([[0], np.cumsum(npoints_in_batch)[:-1]]).astype(np.int32)
        lengths = np.asarray(npoints_in_batch, dtype=np.int32)

        kernel = pl.pallas_call(
            _fused_kernel,
            out_shape=(
                jax.ShapeDtypeStruct((n_pad, heat_out), feat.dtype),
                jax.ShapeDtypeStruct((B, H * act_out), feat.dtype),
            ),
            grid_spec=pltpu.PrefetchScalarGridSpec(
                num_scalar_prefetch=2,
                grid=(n_pad // tm,),
                in_specs=[
                    pl.BlockSpec((tm, D), lambda i, off, ln: (i, 0)),
                    pl.BlockSpec((D, D), lambda i, off, ln: (0, 0)),
                    pl.BlockSpec((1, D), lambda i, off, ln: (0, 0)),
                    pl.BlockSpec((D, heat_out), lambda i, off, ln: (0, 0)),
                    pl.BlockSpec((1, heat_out), lambda i, off, ln: (0, 0)),
                    pl.BlockSpec((D, H * D), lambda i, off, ln: (0, 0)),
                    pl.BlockSpec((1, H * D), lambda i, off, ln: (0, 0)),
                    pl.BlockSpec((H * D, H * act_out), lambda i, off, ln: (0, 0)),
                    pl.BlockSpec((1, H * act_out), lambda i, off, ln: (0, 0)),
                ],
                out_specs=[
                    pl.BlockSpec((tm, heat_out), lambda i, off, ln: (i, 0)),
                    pl.BlockSpec((B, H * act_out), lambda i, off, ln: (0, 0)),
                ],
                scratch_shapes=[pltpu.VMEM((B, D), jnp.float32)],
            ),
            compiler_params=pltpu.CompilerParams(
                # segment-max accumulator carries across the row axis -> arbitrary
                dimension_semantics=("arbitrary",)),
        )

        xt_flat, act_flat = kernel(
            jnp.asarray(offsets), jnp.asarray(lengths), feat_p,
            self.hw1, self.hb1r, self.hw2p, self.hb2p,
            self.aw1_bd, self.ab1_bd, self.aw2_bd, self.ab2_bd)

        # Permutation already baked into the weights -> plain reshape, no transpose.
        xt = xt_flat[:N].reshape(N, H, 3, 2 * pb)
        act = act_flat.reshape(B, H, act_out)
        xr = act[..., : eb * 3].reshape(-1, H, eb, 3)
        xo = act[..., -1]
        return xt, xr, xo

    # pure-JAX reference (original, un-permuted weights) for verification
    def reference(self, feat, npoints_in_batch):
        H, pb, eb = self.horizon, self.pos_bins, self.euler_bins
        B = len(npoints_in_batch)
        n = feat.shape[0]
        lrelu = lambda x: jnp.where(x >= 0, x, 0.02 * x)
        h = lrelu(feat @ self.hw1 + self.hb1)
        xt_flat = h @ self.hw2 + self.hb2
        xt = xt_flat.reshape(n, 3, H, 2 * pb).transpose(0, 2, 1, 3)
        offs = np.concatenate([[0], np.cumsum(npoints_in_batch)[:-1]])
        pc = jnp.stack([jnp.max(feat[o:o + l], axis=0)
                        for o, l in zip(offs, npoints_in_batch)], 0)
        pc = pc.reshape(B, H, self.chunk)
        a = lrelu(pc @ self.aw1 + self.ab1)
        act = a @ self.aw2 + self.ab2
        xr = act[..., : eb * 3].reshape(-1, H, eb, 3)
        xo = act[..., -1]
        return xt, xr, xo


if __name__ == "__main__":
    hidden_size = 32
    horizon = 8
    pos_bins = 4
    euler_resolution = 45            # euler_bins = 8
    npoints_in_batch = [9, 7]        # B = 2, total points = 16
    N = sum(npoints_in_batch)

    head = ActionHeadPallas(hidden_size=hidden_size, horizon=horizon,
                            pos_bins=pos_bins, euler_resolution=euler_resolution)

    key = jax.random.PRNGKey(0)
    feat = jax.random.normal(key, (N, hidden_size), dtype=jnp.float32)

    xt, xr, xo = head(feat, npoints_in_batch)
    jax.block_until_ready((xt, xr, xo))

    # sanity check against pure-JAX reference
    rxt, rxr, rxo = head.reference(feat, npoints_in_batch)
    assert xt.shape == (N, horizon, 3, 2 * pos_bins)
    assert xr.shape == (len(npoints_in_batch), horizon, 360 // euler_resolution, 3)
    assert xo.shape == (len(npoints_in_batch), horizon)
    np.testing.assert_allclose(np.asarray(xt), np.asarray(rxt), rtol=1e-5, atol=1e-5)
    np.testing.assert_allclose(np.asarray(xr), np.asarray(rxr), rtol=1e-5, atol=1e-5)
    np.testing.assert_allclose(np.asarray(xo), np.asarray(rxo), rtol=1e-5, atol=1e-5)

    print("KERNEL_OK")
</pallas_src>

<mosaic_0001>
module attributes {stable_mosaic.version = 11 : i64} {
  func.func @_fused_kernel(%arg0: i32, %arg1: memref<2xi32, #tpu.memory_space<smem>>, %arg2: memref<2xi32, #tpu.memory_space<smem>>, %arg3: memref<16x32xf32, #tpu.memory_space<vmem>>, %arg4: memref<32x32xf32, #tpu.memory_space<vmem>>, %arg5: memref<1x32xf32, #tpu.memory_space<vmem>>, %arg6: memref<32x192xf32, #tpu.memory_space<vmem>>, %arg7: memref<1x192xf32, #tpu.memory_space<vmem>>, %arg8: memref<32x256xf32, #tpu.memory_space<vmem>>, %arg9: memref<1x256xf32, #tpu.memory_space<vmem>>, %arg10: memref<256x200xf32, #tpu.memory_space<vmem>>, %arg11: memref<1x200xf32, #tpu.memory_space<vmem>>, %arg12: memref<16x192xf32, #tpu.memory_space<vmem>>, %arg13: memref<2x200xf32, #tpu.memory_space<vmem>>, %arg14: memref<2x32xf32, #tpu.memory_space<vmem>>) attributes {dimension_semantics = [#tpu.dimension_semantics<arbitrary>], iteration_bounds = array<i64: 1>, scalar_prefetch = 2 : i64, scratch_operands = 1 : i64, tpu.core_type = #tpu.core_type<tc>, window_params = [{transform_indices = @transform_0, window_bounds = array<i64: 16, 32>}, {pipeline_mode = #tpu.pipeline_mode<synchronous>, transform_indices = @transform_1, window_bounds = array<i64: 32, 32>}, {pipeline_mode = #tpu.pipeline_mode<synchronous>, transform_indices = @transform_2, window_bounds = array<i64: 1, 32>}, {pipeline_mode = #tpu.pipeline_mode<synchronous>, transform_indices = @transform_3, window_bounds = array<i64: 32, 192>}, {pipeline_mode = #tpu.pipeline_mode<synchronous>, transform_indices = @transform_4, window_bounds = array<i64: 1, 192>}, {pipeline_mode = #tpu.pipeline_mode<synchronous>, transform_indices = @transform_5, window_bounds = array<i64: 32, 256>}, {pipeline_mode = #tpu.pipeline_mode<synchronous>, transform_indices = @transform_6, window_bounds = array<i64: 1, 256>}, {pipeline_mode = #tpu.pipeline_mode<synchronous>, transform_indices = @transform_7, window_bounds = array<i64: 256, 200>}, {pipeline_mode = #tpu.pipeline_mode<synchronous>, transform_indices = @transform_8, window_bounds = array<i64: 1, 200>}, {transform_indices = @transform_9, window_bounds = array<i64: 16, 192>}, {pipeline_mode = #tpu.pipeline_mode<synchronous>, transform_indices = @transform_10, window_bounds = array<i64: 2, 200>}]} {
    %c0 = arith.constant 0 : index
    %c0_0 = arith.constant 0 : index
    %0 = vector.load %arg3[%c0, %c0_0] : memref<16x32xf32, #tpu.memory_space<vmem>>, vector<16x32xf32>
    %c0_1 = arith.constant 0 : index
    %c0_2 = arith.constant 0 : index
    %1 = vector.load %arg4[%c0_1, %c0_2] : memref<32x32xf32, #tpu.memory_space<vmem>>, vector<32x32xf32>
    %cst = arith.constant dense<0.000000e+00> : vector<16x32xf32>
    %2 = tpu.matmul %0, %1, %cst {dimension_numbers = #tpu.dot_dimension_numbers<[1], [0], [0], [1], [0, 0, 1, 1], [], []>} : vector<16x32xf32>, vector<32x32xf32>, vector<16x32xf32> -> vector<16x32xf32>
    %c0_3 = arith.constant 0 : index
    %c0_4 = arith.constant 0 : index
    %3 = vector.load %arg5[%c0_3, %c0_4] : memref<1x32xf32, #tpu.memory_space<vmem>>, vector<1x32xf32>
    %4 = vector.broadcast %3 : vector<1x32xf32> to vector<16x32xf32>
    %5 = arith.addf %2, %4 : vector<16x32xf32>
    %cst_5 = arith.constant 0.000000e+00 : f32
    %6 = vector.broadcast %cst_5 : f32 to vector<16x32xf32>
    %7 = arith.cmpf oge, %5, %6 : vector<16x32xf32>
    %cst_6 = arith.constant 2.000000e-02 : f32
    %8 = vector.broadcast %cst_6 : f32 to vector<16x32xf32>
    %9 = arith.mulf %8, %5 : vector<16x32xf32>
    %10 = arith.select %7, %5, %9 : vector<16x32xi1>, vector<16x32xf32>
    %c0_7 = arith.constant 0 : index
    %c0_8 = arith.constant 0 : index
    %11 = vector.load %arg6[%c0_7, %c0_8] : memref<32x192xf32, #tpu.memory_space<vmem>>, vector<32x192xf32>
    %cst_9 = arith.constant dense<0.000000e+00> : vector<16x192xf32>
    %12 = tpu.matmul %10, %11, %cst_9 {dimension_numbers = #tpu.dot_dimension_numbers<[1], [0], [0], [1], [0, 0, 1, 1], [], []>} : vector<16x32xf32>, vector<32x192xf32>, vector<16x192xf32> -> vector<16x192xf32>
    %c0_10 = arith.constant 0 : index
    %c0_11 = arith.constant 0 : index
    %13 = vector.load %arg7[%c0_10, %c0_11] : memref<1x192xf32, #tpu.memory_space<vmem>>, vector<1x192xf32>
    %14 = vector.broadcast %13 : vector<1x192xf32> to vector<16x192xf32>
    %15 = arith.addf %12, %14 : vector<16x192xf32>
    %c0_12 = arith.constant 0 : index
    %c0_13 = arith.constant 0 : index
    %16 = vector.load %arg12[%c0_12, %c0_13] : memref<16x192xf32, #tpu.memory_space<vmem>>, vector<16x192xf32>
    tpu.vector_store %arg12[%c0_12, %c0_13], %15 {strides = array<i32>} : memref<16x192xf32, #tpu.memory_space<vmem>>, vector<16x192xf32>,
    %c0_i32 = arith.constant 0 : i32
    %17 = arith.cmpi eq, %arg0, %c0_i32 : i32
    %18 = arith.extui %17 : i1 to i32
    %c0_i32_14 = arith.constant 0 : i32
    %19 = arith.cmpi ne, %18, %c0_i32_14 : i32
    scf.if %19 {
      %cst_32 = arith.constant 0xFF800000 : f32
      %61 = vector.broadcast %cst_32 : f32 to vector<2x32xf32>
      %c0_33 = arith.constant 0 : index
      %c0_34 = arith.constant 0 : index
      %62 = vector.load %arg14[%c0_33, %c0_34] : memref<2x32xf32, #tpu.memory_space<vmem>>, vector<2x32xf32>
      tpu.vector_store %arg14[%c0_33, %c0_34], %61 {strides = array<i32>} : memref<2x32xf32, #tpu.memory_space<vmem>>, vector<2x32xf32>,
    } else {
    }
    %c16_i32 = arith.constant 16 : i32
    %20 = arith.muli %arg0, %c16_i32 : i32
    %21 = tpu.iota {dimensions = array<i32: 0>} : vector<16x1xi32>
    %22 = vector.broadcast %20 : i32 to vector<16x1xi32>
    %23 = arith.addi %22, %21 : vector<16x1xi32>
    %c0_15 = arith.constant 0 : index
    %24 = memref.load %arg1[%c0_15] : memref<2xi32, #tpu.memory_space<smem>>
    %c0_16 = arith.constant 0 : index
    %25 = memref.load %arg2[%c0_16] : memref<2xi32, #tpu.memory_space<smem>>
    %26 = arith.addi %24, %25 : i32
    %27 = vector.broadcast %24 : i32 to vector<16x1xi32>
    %28 = arith.cmpi sge, %23, %27 : vector<16x1xi32>
    %29 = vector.broadcast %26 : i32 to vector<16x1xi32>
    %30 = arith.cmpi slt, %23, %29 : vector<16x1xi32>
    %31 = arith.andi %28, %30 : vector<16x1xi1>
    %cst_17 = arith.constant 0xFF800000 : f32
    %32 = vector.shape_cast %31 : vector<16x1xi1> to vector<16x1xi1>
    %33 = vector.broadcast %32 : vector<16x1xi1> to vector<16x32xi1>
    %34 = vector.broadcast %cst_17 : f32 to vector<16x32xf32>
    %35 = arith.select %33, %0, %34 : vector<16x32xi1>, vector<16x32xf32>
    %cst_18 = arith.constant dense<0xFF800000> : vector<32xf32>
    %36 = vector.multi_reduction <maximumf>, %35, %cst_18 [0] : vector<16x32xf32> to vector<32xf32>
    %37 = vector.shape_cast %36 : vector<32xf32> to vector<1x32xf32>
    %c0_19 = arith.constant 0 : index
    %c0_20 = arith.constant 0 : index
    %38 = vector.load %arg14[%c0_19, %c0_20] : memref<2x32xf32, #tpu.memory_space<vmem>>, vector<1x32xf32>
    %39 = arith.maximumf %38, %37 : vector<1x32xf32>
    %c0_21 = arith.constant 0 : index
    %c0_22 = arith.constant 0 : index
    %40 = vector.load %arg14[%c0_21, %c0_22] : memref<2x32xf32, #tpu.memory_space<vmem>>, vector<1x32xf32>
    tpu.vector_store %arg14[%c0_21, %c0_22], %39 {strides = array<i32>} : memref<2x32xf32, #tpu.memory_space<vmem>>, vector<1x32xf32>,
    %c1 = arith.constant 1 : index
    %41 = memref.load %arg1[%c1] : memref<2xi32, #tpu.memory_space<smem>>
    %c1_23 = arith.constant 1 : index
    %42 = memref.load %arg2[%c1_23] : memref<2xi32, #tpu.memory_space<smem>>
    %43 = arith.addi %41, %42 : i32
    %44 = vector.broadcast %41 : i32 to vector<16x1xi32>
    %45 = arith.cmpi sge, %23, %44 : vector<16x1xi32>
    %46 = vector.broadcast %43 : i32 to vector<16x1xi32>
    %47 = arith.cmpi slt, %23, %46 : vector<16x1xi32>
    %48 = arith.andi %45, %47 : vector<16x1xi1>
    %cst_24 = arith.constant 0xFF800000 : f32
    %49 = vector.shape_cast %48 : vector<16x1xi1> to vector<16x1xi1>
    %50 = vector.broadcast %49 : vector<16x1xi1> to vector<16x32xi1>
    %51 = vector.broadcast %cst_24 : f32 to vector<16x32xf32>
    %52 = arith.select %50, %0, %51 : vector<16x32xi1>, vector<16x32xf32>
    %cst_25 = arith.constant dense<0xFF800000> : vector<32xf32>
    %53 = vector.multi_reduction <maximumf>, %52, %cst_25 [0] : vector<16x32xf32> to vector<32xf32>
    %54 = vector.shape_cast %53 : vector<32xf32> to vector<1x32xf32>
    %c1_26 = arith.constant 1 : index
    %c0_27 = arith.constant 0 : index
    %55 = vector.load %arg14[%c1_26, %c0_27] : memref<2x32xf32, #tpu.memory_space<vmem>>, vector<1x32xf32>
    %56 = arith.maximumf %55, %54 : vector<1x32xf32>
    %c1_28 = arith.constant 1 : index
    %c0_29 = arith.constant 0 : index
    %57 = vector.load %arg14[%c1_28, %c0_29] : memref<2x32xf32, #tpu.memory_space<vmem>>, vector<1x32xf32>
    tpu.vector_store %arg14[%c1_28, %c0_29], %56 {strides = array<i32>} : memref<2x32xf32, #tpu.memory_space<vmem>>, vector<1x32xf32>,
    %c0_i32_30 = arith.constant 0 : i32
    %58 = arith.cmpi eq, %arg0, %c0_i32_30 : i32
    %59 = arith.extui %58 : i1 to i32
    %c0_i32_31 = arith.constant 0 : i32
    %60 = arith.cmpi ne, %59, %c0_i32_31 : i32
    scf.if %60 {
      %c0_32 = arith.constant 0 : index
      %c0_33 = arith.constant 0 : index
      %61 = vector.load %arg14[%c0_32, %c0_33] : memref<2x32xf32, #tpu.memory_space<vmem>>, vector<2x32xf32>
      %c0_34 = arith.constant 0 : index
      %c0_35 = arith.constant 0 : index
      %62 = vector.load %arg8[%c0_34, %c0_35] : memref<32x256xf32, #tpu.memory_space<vmem>>, vector<32x256xf32>
      %cst_36 = arith.constant dense<0.000000e+00> : vector<2x256xf32>
      %63 = tpu.matmul %61, %62, %cst_36 {dimension_numbers = #tpu.dot_dimension_numbers<[1], [0], [0], [1], [0, 0, 1, 1], [], []>} : vector<2x32xf32>, vector<32x256xf32>, vector<2x256xf32> -> vector<2x256xf32>
      %c0_37 = arith.constant 0 : index
      %c0_38 = arith.constant 0 : index
      %64 = vector.load %arg9[%c0_37, %c0_38] : memref<1x256xf32, #tpu.memory_space<vmem>>, vector<1x256xf32>
      %65 = vector.broadcast %64 : vector<1x256xf32> to vector<2x256xf32>
      %66 = arith.addf %63, %65 : vector<2x256xf32>
      %cst_39 = arith.constant 0.000000e+00 : f32
      %67 = vector.broadcast %cst_39 : f32 to vector<2x256xf32>
      %68 = arith.cmpf oge, %66, %67 : vector<2x256xf32>
      %cst_40 = arith.constant 2.000000e-02 : f32
      %69 = vector.broadcast %cst_40 : f32 to vector<2x256xf32>
      %70 = arith.mulf %69, %66 : vector<2x256xf32>
      %71 = arith.select %68, %66, %70 : vector<2x256xi1>, vector<2x256xf32>
      %c0_41 = arith.constant 0 : index
      %c0_42 = arith.constant 0 : index
      %72 = vector.load %arg10[%c0_41, %c0_42] : memref<256x200xf32, #tpu.memory_space<vmem>>, vector<256x200xf32>
      %cst_43 = arith.constant dense<0.000000e+00> : vector<2x200xf32>
      %73 = tpu.matmul %71, %72, %cst_43 {dimension_numbers = #tpu.dot_dimension_numbers<[1], [0], [0], [1], [0, 0, 1, 1], [], []>} : vector<2x256xf32>, vector<256x200xf32>, vector<2x200xf32> -> vector<2x200xf32>
      %c0_44 = arith.constant 0 : index
      %c0_45 = arith.constant 0 : index
      %74 = vector.load %arg11[%c0_44, %c0_45] : memref<1x200xf32, #tpu.memory_space<vmem>>, vector<1x200xf32>
      %75 = vector.broadcast %74 : vector<1x200xf32> to vector<2x200xf32>
      %76 = arith.addf %73, %75 : vector<2x200xf32>
      %c0_46 = arith.constant 0 : index
      %c0_47 = arith.constant 0 : index
      %77 = vector.load %arg13[%c0_46, %c0_47] : memref<2x200xf32, #tpu.memory_space<vmem>>, vector<2x200xf32>
      tpu.vector_store %arg13[%c0_46, %c0_47], %76 {strides = array<i32>} : memref<2x200xf32, #tpu.memory_space<vmem>>, vector<2x200xf32>,
    } else {
    }
    return
  }
  func.func @transform_0(%arg0: i32, %arg1: memref<2xi32, #tpu.memory_space<smem>>, %arg2: memref<2xi32, #tpu.memory_space<smem>>) -> (i32, i32) {
    %c0_i32 = arith.constant 0 : i32
    %c0_i32_0 = arith.constant 0 : i32
    return %arg0, %c0_i32 : i32, i32
  }
  func.func @transform_1(%arg0: i32, %arg1: memref<2xi32, #tpu.memory_space<smem>>, %arg2: memref<2xi32, #tpu.memory_space<smem>>) -> (i32, i32) {
    %c0_i32 = arith.constant 0 : i32
    %c0_i32_0 = arith.constant 0 : i32
    %c0_i32_1 = arith.constant 0 : i32
    return %c0_i32, %c0_i32_0 : i32, i32
  }
  func.func @transform_2(%arg0: i32, %arg1: memref<2xi32, #tpu.memory_space<smem>>, %arg2: memref<2xi32, #tpu.memory_space<smem>>) -> (i32, i32) {
    %c0_i32 = arith.constant 0 : i32
    %c0_i32_0 = arith.constant 0 : i32
    %c0_i32_1 = arith.constant 0 : i32
    return %c0_i32, %c0_i32_0 : i32, i32
  }
  func.func @transform_3(%arg0: i32, %arg1: memref<2xi32, #tpu.memory_space<smem>>, %arg2: memref<2xi32, #tpu.memory_space<smem>>) -> (i32, i32) {
    %c0_i32 = arith.constant 0 : i32
    %c0_i32_0 = arith.constant 0 : i32
    %c0_i32_1 = arith.constant 0 : i32
    return %c0_i32, %c0_i32_0 : i32, i32
  }
  func.func @transform_4(%arg0: i32, %arg1: memref<2xi32, #tpu.memory_space<smem>>, %arg2: memref<2xi32, #tpu.memory_space<smem>>) -> (i32, i32) {
    %c0_i32 = arith.constant 0 : i32
    %c0_i32_0 = arith.constant 0 : i32
    %c0_i32_1 = arith.constant 0 : i32
    return %c0_i32, %c0_i32_0 : i32, i32
  }
  func.func @transform_5(%arg0: i32, %arg1: memref<2xi32, #tpu.memory_space<smem>>, %arg2: memref<2xi32, #tpu.memory_space<smem>>) -> (i32, i32) {
    %c0_i32 = arith.constant 0 : i32
    %c0_i32_0 = arith.constant 0 : i32
    %c0_i32_1 = arith.constant 0 : i32
    return %c0_i32, %c0_i32_0 : i32, i32
  }
  func.func @transform_6(%arg0: i32, %arg1: memref<2xi32, #tpu.memory_space<smem>>, %arg2: memref<2xi32, #tpu.memory_space<smem>>) -> (i32, i32) {
    %c0_i32 = arith.constant 0 : i32
    %c0_i32_0 = arith.constant 0 : i32
    %c0_i32_1 = arith.constant 0 : i32
    return %c0_i32, %c0_i32_0 : i32, i32
  }
  func.func @transform_7(%arg0: i32, %arg1: memref<2xi32, #tpu.memory_space<smem>>, %arg2: memref<2xi32, #tpu.memory_space<smem>>) -> (i32, i32) {
    %c0_i32 = arith.constant 0 : i32
    %c0_i32_0 = arith.constant 0 : i32
    %c0_i32_1 = arith.constant 0 : i32
    return %c0_i32, %c0_i32_0 : i32, i32
  }
  func.func @transform_8(%arg0: i32, %arg1: memref<2xi32, #tpu.memory_space<smem>>, %arg2: memref<2xi32, #tpu.memory_space<smem>>) -> (i32, i32) {
    %c0_i32 = arith.constant 0 : i32
    %c0_i32_0 = arith.constant 0 : i32
    %c0_i32_1 = arith.constant 0 : i32
    return %c0_i32, %c0_i32_0 : i32, i32
  }
  func.func @transform_9(%arg0: i32, %arg1: memref<2xi32, #tpu.memory_space<smem>>, %arg2: memref<2xi32, #tpu.memory_space<smem>>) -> (i32, i32) {
    %c0_i32 = arith.constant 0 : i32
    %c0_i32_0 = arith.constant 0 : i32
    return %arg0, %c0_i32 : i32, i32
  }
  func.func @transform_10(%arg0: i32, %arg1: memref<2xi32, #tpu.memory_space<smem>>, %arg2: memref<2xi32, #tpu.memory_space<smem>>) -> (i32, i32) {
    %c0_i32 = arith.constant 0 : i32
    %c0_i32_0 = arith.constant 0 : i32
    %c0_i32_1 = arith.constant 0 : i32
    return %c0_i32, %c0_i32_0 : i32, i32
  }
}

</mosaic_0001>

<bundles_post_ra>
// kernel: tpu_custom_call.1
= control target key start
LH: loop header
LB: loop body
LE: loop exit
PB: predicated region body
PF: predicated region fallthrough
CT: control target
= control target key end

     0   :  { %s1225_s0 = inlined_call_operand.vmem [shape: s32[2], index: 0, kind: input, shape index: {}]   ;;  %s1226_s2 = inlined_call_operand.vmem [shape: f32[16,32], index: 2, kind: input, shape index: {}]   ;;  %s1227_s3 = inlined_call_operand.vmem [shape: f32[32,32], index: 3, kind: input, shape index: {}]   ;;  %s1228_s4 = inlined_call_operand.vmem [shape: f32[1,32], index: 4, kind: input, shape index: {}]   ;;  %s1229_s5 = inlined_call_operand.vmem [shape: f32[32,192], index: 5, kind: input, shape index: {}]   ;;  %s1230_s6 = inlined_call_operand.vmem [shape: f32[1,192], index: 6, kind: input, shape index: {}]   ;;  %s1231_s7 = inlined_call_operand.vmem [shape: f32[32,256], index: 7, kind: input, shape index: {}]   ;;  %s1232_s8 = inlined_call_operand.vmem [shape: f32[1,256], index: 8, kind: input, shape index: {}]   ;;  %s1233_s9 = inlined_call_operand.vmem [shape: f32[256,200], index: 9, kind: input, shape index: {}]   ;;  %s1234_s10 = inlined_call_operand.vmem [shape: f32[1,200], index: 10, kind: input, shape index: {}]   ;;  %s1235_s11 = inlined_call_operand.hbm [shape: f32[16,192], index: 11, kind: output, shape index: {0}]   ;;  %s1236_s12 = inlined_call_operand.hbm [shape: f32[2,200], index: 12, kind: output, shape index: {1}]   ;;  %s1237_s1 = inlined_call_operand.vmem [shape: s32[2], index: 1, kind: input, shape index: {}]  }
   0x1   :  { %s18_s23 = sshll.u32 %s1225_s0, 4  ;;  %s22_s26 = sshll.u32 %s1237_s1, 4  ;;  %s19_s23 = int_to_ptr.vmem [resolvable:$true] %s18_s23  ;;  %s23_s26 = int_to_ptr.vmem [resolvable:$true] %s22_s26 }
   0x2   :  { %s747_s27 = scalar_lea.vmem %s19_s23, 16  ;;  %p752_p1 = scmp.lt.s32.totalorder %s19_s23, %s19_s23 }
   0x3   :  { %p748_p0 = scmp.ne.s32.totalorder %s19_s23, %s747_s27  ;;  %p753_p2 = scmp.lt.s32.totalorder %s747_s27, %s747_s27 }
   0x5   :  { %p754_p3 = por %p753_p2, %p752_p1 }
   0x7   :  { %p755_p4 = pnand %p754_p3, %p748_p0 }
   0x9   :  { %758 = shalt.err (!%p755_p4)  }
   0xa   :  { %s821_s28 = smov [#allocation4]   ;;  %s759_s29 = scalar_lea.vmem %s23_s26, 16 }
   0xb   :  { %21 = dma.vmem_to_smem %s19_s23, 16, %s821_s28, [#allocation3] }
   0xc   :  { %p760_p5 = scmp.ne.s32.totalorder %s23_s26, %s759_s29  ;;  %p764_p6 = scmp.lt.s32.totalorder %s23_s26, %s23_s26 }
   0xd   :  { %p765_p7 = scmp.lt.s32.totalorder %s759_s29, %s759_s29 }
   0xf   :  { %p766_p8 = por %p765_p7, %p764_p6 }
  0x11   :  { %p767_p9 = pnand %p766_p8, %p760_p5 }
  0x13   :  { %770 = shalt.err (!%p767_p9)  }
  0x14   :  { %s822_s0 = smov [#allocation5]  }
  0x15   :  { %25 = dma.vmem_to_smem %s23_s26, 16, %s822_s0, [#allocation3] }
  0x16   :  { %815 = dma.done.wait [#allocation3], 32 }
  0x17   :  { %816 = vsyncadd [#allocation3], 4294967264 }
  0x18   :  { %27 = sfence }
  0x19   :  { %28 = vsyncpa [#allocation7], 0  ;;  %v50_v0 = vld [vmem:[%s1227_s3] sm:$0xff]  ;;  %v51_v1 = vld [vmem:[%s1227_s3 + $0x8] sm:$0xff]  ;;  %vm61_vm0 = vcmask 261120   ;;  %v159_v3 = vlaneseq  ;;  %s910_s17 = sld [smem:[#allocation4]] }
  0x1a   :  { %v52_v2 = vld [vmem:[%s1227_s3 + $0x10] sm:$0xff]  ;;  %v650_v4 = vpack.c.bf16 %v51_v1, %v50_v0  ;;  %v53_v5 = vld [vmem:[%s1227_s3 + $0x18] sm:$0xff]  ;;  %v48_v6 = vld [vmem:[%s1226_s2] sm:$0xff]  ;;  %s271_s22 = sld [smem:[#allocation5]]  ;;  %s918_s23 = sld [smem:[#allocation4 + $0x1]]  ;;  %vm261_vm1 = vcmask 254976  }
  0x1b   :  { %v654_v7 = vpack.c.bf16 %v53_v5, %v52_v2  ;;  %647 = vmatprep.mubr.msk.f32.mxu0 %vm61_vm0, %v48_v6  ;;  %v921_v8 = vshrl.u32 %v159_v3, 7  ;;  %s631_s24 = sld [smem:[#allocation5 + $0x1]]  ;;  %v823_v9 = vmov -inf   ;;  %v150_v10 = vld [vmem:[%s1229_s5 + $0x8] sm:$0xff]  ;;  %v152_v11 = vld [vmem:[%s1229_s5 + $0x18] sm:$0xff] }
  0x1c   :  { %651 = vmatprep.subr.bf16.mxu0 %v650_v4  ;;  %262 = vst.msk [vmem:[#allocation2] sm:$0x3] %vm261_vm1, %v823_v9 }
  0x1d   :  { %653 = vmatpush3.bf16.msra.mxu0 %v650_v4 }
  0x1e   :  { %29 = vsyncpa [#allocation9], 0  ;;  %655 = vmatprep.subr.bf16.mxu0 %v654_v7  ;;  %v266_v12 = vadd.s32 8, %v921_v8  ;;  %v658_v13 = vpack.c.bf16 %v152_v11, %v150_v10  ;;  %v149_v14 = vld [vmem:[%s1229_s5] sm:$0xff]  ;;  %v151_v15 = vld [vmem:[%s1229_s5 + $0x10] sm:$0xff]  ;;  %vm298_vm14 = vcmask 253952  }
  0x1f   :  { %v273_v16 = vstv %s910_s17  ;;  %v49_v19 = vld [vmem:[%s1226_s2 + $0x8] sm:$0xff]  ;;  %v660_v20 = vpack.c.bf16 %v151_v15, %v149_v14  ;;  %v156_v49 = vld [vmem:[%s1229_s5 + $0x38] sm:$0xff]  ;;  %v153_v51 = vld [vmem:[%s1229_s5 + $0x20] sm:$0xff]  ;;  %v824_v57 = vmov 0.0  }
  0x20   :  { %s272_s30 = sadd.s32 %s271_s22, %s910_s17  ;;  %vm274_vm2 = vcmp.ge.s32.totalorder %v921_v8, %v273_v16  ;;  %v303_v17 = vstv %s918_s23  ;;  %vm275_vm5 = vcmp.ge.s32.totalorder %v266_v12, %v273_v16  ;;  %v154_v48 = vld [vmem:[%s1229_s5 + $0x28] sm:$0xff]  ;;  %v155_v52 = vld [vmem:[%s1229_s5 + $0x30] sm:$0xff]  ;;  %v336_v55 = vld [vmem:[%s1231_s7 + $0x18] sm:$0xff] }
  0x21   :  { %657 = vmatpush3.bf16.msra.mxu0 %v654_v7  ;;  %v276_v18 = vstv %s272_s30  ;;  %s302_s13 = sadd.s32 %s631_s24, %s918_s23  ;;  %vm304_vm3 = vcmp.ge.s32.totalorder %v921_v8, %v303_v17  ;;  %vm305_vm9 = vcmp.ge.s32.totalorder %v266_v12, %v303_v17  ;;  %v662_v50 = vpack.c.bf16 %v156_v49, %v154_v48  ;;  %v334_v54 = vld [vmem:[%s1231_s7 + $0x8] sm:$0xff]  ;;  %v436_v59 = vld [vmem:[%s1233_s9 + $0x18] sm:$0xff]  ;;  %v433_v60 = vld [vmem:[%s1233_s9] sm:$0xff] }
  0x22   :  { %vm277_vm4 = vcmp.lt.s32.totalorder %v921_v8, %v276_v18  ;;  %v306_v21 = vstv %s302_s13  ;;  %vm278_vm6 = vcmp.lt.s32.totalorder %v266_v12, %v276_v18  ;;  %659 = vmatprep.subr.bf16.mxu0 %v658_v13  ;;  %v664_v53 = vpack.c.bf16 %v155_v52, %v153_v51  ;;  %v434_v58 = vld [vmem:[%s1233_s9 + $0x8] sm:$0xff]  ;;  %v435_v62 = vld [vmem:[%s1233_s9 + $0x10] sm:$0xff]  ;;  %v440_v0 = vld [vmem:[%s1233_s9 + $0x38] sm:$0xff] }
  0x23   :  { %vm279_vm7 = vmand %vm274_vm2, %vm277_vm4  ;;  %vm307_vm8 = vcmp.lt.s32.totalorder %v921_v8, %v306_v21  ;;  %vm308_vm10 = vcmp.lt.s32.totalorder %v266_v12, %v306_v21  ;;  %v296_v41 = vld [vmem:[#allocation2] sm:$0x1]  ;;  %v326_v44 = vld [vmem:[#allocation2 + $0x1] sm:$0x1]  ;;  %v666_v56 = vpack.c.bf16 %v336_v55, %v334_v54  ;;  %v674_v61 = vpack.c.bf16 %v436_v59, %v434_v58 }
  0x24   :  { %v285_v22 = vsel %vm279_vm7, %v48_v6, -inf  ;;  %vm309_vm11 = vmand %vm304_vm3, %vm307_vm8  ;;  %648 = vmatmul.mubr.msk.f32.vlgmr.msra.gmra.mrb[0].mxu0 %vm61_vm0, %v49_v19  ;;  %v438_v63 = vld [vmem:[%s1233_s9 + $0x28] sm:$0xff]  ;;  %v676_v1 = vpack.c.bf16 %v435_v62, %v433_v60  ;;  %v437_v3 = vld [vmem:[%s1233_s9 + $0x20] sm:$0xff] }
  0x25   :  { %v287_v23 = vsel %vm61_vm0, %v285_v22, -inf  ;;  %v315_v24 = vsel %vm309_vm11, %v48_v6, -inf  ;;  %vm280_vm12 = vmand %vm275_vm5, %vm278_vm6  ;;  %661 = vmatpush1.bf16.msra.mxu0 %v660_v20  ;;  %239 = vmatprep.mubr.f32.mxu0 %v824_v57  ;;  %v678_v2 = vpack.c.bf16 %v440_v0, %v438_v63  ;;  %v439_v4 = vld [vmem:[%s1233_s9 + $0x30] sm:$0xff]  ;;  %v442_v5 = vld [vmem:[%s1233_s9 + $0x48] sm:$0xff] }
  0x26   :  { %v317_v25 = vsel %vm61_vm0, %v315_v24, -inf  ;;  %v286_v26 = vsel %vm280_vm12, %v49_v19, -inf  ;;  %vm310_vm13 = vmand %vm305_vm9, %vm308_vm10  ;;  %663 = vmatprep.subr.bf16.mxu0 %v662_v50  ;;  %675 = vmatprep.subr.bf16.mxu1 %v674_v61  ;;  %v444_v6 = vld [vmem:[%s1233_s9 + $0x58] sm:$0xff]  ;;  %v680_v7 = vpack.c.bf16 %v439_v4, %v437_v3  ;;  %v441_v10 = vld [vmem:[%s1233_s9 + $0x40] sm:$0xff] }
  0x27   :  { %v288_v27 = vsel %vm61_vm0, %v286_v26, -inf  ;;  %v316_v28 = vsel %vm310_vm13, %v49_v19, -inf  ;;  %677 = vmatpush1.bf16.msra.mxu1 %v676_v1  ;;  %v682_v9 = vpack.c.bf16 %v444_v6, %v442_v5  ;;  %v443_v11 = vld [vmem:[%s1233_s9 + $0x50] sm:$0xff]  ;;  %v446_v12 = vld [vmem:[%s1233_s9 + $0x68] sm:$0xff]  ;;  %v448_v13 = vld [vmem:[%s1233_s9 + $0x78] sm:$0xff] }
  0x28   :  { %v289_v29 = vmax.f32 %v287_v23, %v288_v27  ;;  %v318_v30 = vsel %vm61_vm0, %v316_v28, -inf  ;;  %679 = vmatprep.subr.bf16.mxu1 %v678_v2  ;;  %v684_v14 = vpack.c.bf16 %v443_v11, %v441_v10  ;;  %v686_v15 = vpack.c.bf16 %v448_v13, %v446_v12  ;;  %v445_v16 = vld [vmem:[%s1233_s9 + $0x60] sm:$0xff]  ;;  %v447_v17 = vld [vmem:[%s1233_s9 + $0x70] sm:$0xff]  ;;  %v450_v18 = vld [vmem:[%s1233_s9 + $0x88] sm:$0xff] }
  0x29   :  { %v319_v31 = vmax.f32 %v317_v25, %v318_v30  ;;  %665 = vmatpush1.bf16.msra.mxu0 %v664_v53  ;;  %v452_v19 = vld [vmem:[%s1233_s9 + $0x98] sm:$0xff]  ;;  %v688_v20 = vpack.c.bf16 %v447_v17, %v445_v16  ;;  %v449_v22 = vld [vmem:[%s1233_s9 + $0x80] sm:$0xff]  ;;  %v451_v23 = vld [vmem:[%s1233_s9 + $0x90] sm:$0xff] }
  0x2a   :  { %v290_v32 = vrot.slane %v289_v29, 4  ;;  %667 = vmatprep.subr.bf16.mxu0 %v666_v56  ;;  %v690_v21 = vpack.c.bf16 %v452_v19, %v450_v18  ;;  %v454_v24 = vld [vmem:[%s1233_s9 + $0xa8] sm:$0xff]  ;;  %v456_v25 = vld [vmem:[%s1233_s9 + $0xb8] sm:$0xff]  ;;  %v692_v26 = vpack.c.bf16 %v451_v23, %v449_v22  ;;  %v453_v28 = vld [vmem:[%s1233_s9 + $0xa0] sm:$0xff] }
  0x2b   :  { %v320_v33 = vrot.slane %v319_v31, 4  ;;  %681 = vmatpush1.bf16.msra.mxu1 %v680_v7  ;;  %v694_v27 = vpack.c.bf16 %v456_v25, %v454_v24  ;;  %v458_v30 = vld [vmem:[%s1233_s9 + $0xc8] sm:$0xff]  ;;  %v472_v49 = vld [vmem:[%s1233_s9 + $0x138] sm:$0xff]  ;;  %v469_v52 = vld [vmem:[%s1233_s9 + $0x120] sm:$0xff] }
  0x2c   :  { %v291_v34 = vmax.f32 %v289_v29, %v290_v32  ;;  %683 = vmatprep.subr.bf16.mxu1 %v682_v9  ;;  %v455_v29 = vld [vmem:[%s1233_s9 + $0xb0] sm:$0xff]  ;;  %v470_v48 = vld [vmem:[%s1233_s9 + $0x128] sm:$0xff]  ;;  %v476_v55 = vld [vmem:[%s1233_s9 + $0x158] sm:$0xff] }
  0x2d   :  { %v321_v35 = vmax.f32 %v319_v31, %v320_v33  ;;  %v460_v31 = vld [vmem:[%s1233_s9 + $0xd8] sm:$0xff]  ;;  %v696_v32 = vpack.c.bf16 %v455_v29, %v453_v28  ;;  %v710_v51 = vpack.c.bf16 %v472_v49, %v470_v48  ;;  %v471_v53 = vld [vmem:[%s1233_s9 + $0x130] sm:$0xff]  ;;  %v474_v54 = vld [vmem:[%s1233_s9 + $0x148] sm:$0xff]  ;;  %v165_v49 = vsub.s32 1, %v921_v8 }
  0x2e   :  { %v292_v36 = vrot.slane %v291_v34, 2  ;;  %v698_v33 = vpack.c.bf16 %v460_v31, %v458_v30  ;;  %v712_v56 = vpack.c.bf16 %v471_v53, %v469_v52  ;;  %v714_v58 = vpack.c.bf16 %v476_v55, %v474_v54  ;;  %v473_v59 = vld [vmem:[%s1233_s9 + $0x140] sm:$0xff]  ;;  %v475_v60 = vld [vmem:[%s1233_s9 + $0x150] sm:$0xff]  ;;  %v478_v61 = vld [vmem:[%s1233_s9 + $0x168] sm:$0xff] }
  0x2f   :  { %v322_v37 = vrot.slane %v321_v35, 2  ;;  %685 = vmatpush1.bf16.msra.mxu1 %v684_v14  ;;  %v480_v62 = vld [vmem:[%s1233_s9 + $0x178] sm:$0xff]  ;;  %v716_v63 = vpack.c.bf16 %v475_v60, %v473_v59  ;;  %v477_v1 = vld [vmem:[%s1233_s9 + $0x160] sm:$0xff]  ;;  %v479_v2 = vld [vmem:[%s1233_s9 + $0x170] sm:$0xff] }
  0x30   :  { %v293_v38 = vmax.f32 %v291_v34, %v292_v36  ;;  %687 = vmatprep.subr.bf16.mxu1 %v686_v15  ;;  %v457_v34 = vld [vmem:[%s1233_s9 + $0xc0] sm:$0xff]  ;;  %v462_v36 = vld [vmem:[%s1233_s9 + $0xe8] sm:$0xff]  ;;  %v718_v0 = vpack.c.bf16 %v480_v62, %v478_v61  ;;  %v720_v3 = vpack.c.bf16 %v479_v2, %v477_v1  ;;  %v335_v9 = vld [vmem:[%s1231_s7 + $0x10] sm:$0xff] }
  0x31   :  { %v323_v39 = vmax.f32 %v321_v35, %v322_v37  ;;  %v459_v35 = vld [vmem:[%s1233_s9 + $0xd0] sm:$0xff]  ;;  %v464_v37 = vld [vmem:[%s1233_s9 + $0xf8] sm:$0xff]  ;;  %v625_v4 = vld [vmem:[%s1228_s4] ss:$0 sm:$0xff] }
  0x32   :  { %v294_v40 = vrot.slane %v293_v38, 1  ;;  %v333_v7 = vld [vmem:[%s1231_s7] sm:$0xff]  ;;  %v338_v12 = vld [vmem:[%s1231_s7 + $0x28] sm:$0xff]  ;;  %v340_v13 = vld [vmem:[%s1231_s7 + $0x38] sm:$0xff] }
  0x33   :  { %v324_v42 = vrot.slane %v323_v39, 1  ;;  %689 = vmatpush1.bf16.msra.mxu1 %v688_v20  ;;  %v668_v15 = vpack.c.bf16 %v335_v9, %v333_v7  ;;  %v670_v16 = vpack.c.bf16 %v340_v13, %v338_v12  ;;  %v337_v17 = vld [vmem:[%s1231_s7 + $0x20] sm:$0xff]  ;;  %v339_v18 = vld [vmem:[%s1231_s7 + $0x30] sm:$0xff]  ;;  %v482_v24 = vld [vmem:[%s1233_s9 + $0x188] sm:$0xff] }
  0x34   :  { %v295_v43 = vmax.f32 %v293_v38, %v294_v40  ;;  %691 = vmatprep.subr.bf16.mxu1 %v690_v21  ;;  %v700_v38 = vpack.c.bf16 %v459_v35, %v457_v34  ;;  %v461_v40 = vld [vmem:[%s1233_s9 + $0xe0] sm:$0xff]  ;;  %v672_v21 = vpack.c.bf16 %v339_v18, %v337_v17  ;;  %v484_v25 = vld [vmem:[%s1233_s9 + $0x198] sm:$0xff]  ;;  %v486_v29 = vld [vmem:[%s1233_s9 + $0x1a8] sm:$0xff] }
  0x35   :  { %v325_v45 = vmax.f32 %v323_v39, %v324_v42  ;;  %v702_v39 = vpack.c.bf16 %v464_v37, %v462_v36  ;;  %v466_v42 = vld [vmem:[%s1233_s9 + $0x108] sm:$0xff]  ;;  %v488_v30 = vld [vmem:[%s1233_s9 + $0x1b8] sm:$0xff]  ;;  %v157_v48 = vld [vmem:[%s1230_s6] sm:$0x3]  ;;  %s825_s6 = smov [#allocation6]  }
  0x36   :  { %v297_v46 = vmax.f32 %v296_v41, %v295_v43  ;;  %v463_v41 = vld [vmem:[%s1233_s9 + $0xf0] sm:$0xff]  ;;  %v468_v43 = vld [vmem:[%s1233_s9 + $0x118] sm:$0xff]  ;;  %v726_v31 = vpack.c.bf16 %v488_v30, %v486_v29  ;;  %v490_v35 = vld [vmem:[%s1233_s9 + $0x1c8] sm:$0xff] }
  0x37   :  { %v327_v47 = vmax.f32 %v326_v44, %v325_v45  ;;  %693 = vmatpush1.bf16.msra.mxu1 %v692_v26  ;;  %v704_v44 = vpack.c.bf16 %v463_v41, %v461_v40  ;;  %v706_v45 = vpack.c.bf16 %v468_v43, %v466_v42  ;;  %v722_v26 = vpack.c.bf16 %v484_v25, %v482_v24  ;;  %v492_v36 = vld [vmem:[%s1233_s9 + $0x1d8] sm:$0xff]  ;;  %v494_v41 = vld [vmem:[%s1233_s9 + $0x1e8] sm:$0xff] }
  0x38   :  { %299 = vst.msk [vmem:[#allocation2] sm:$0x1] %vm298_vm14, %v297_v46  ;;  %695 = vmatprep.subr.bf16.mxu1 %v694_v27  ;;  %v465_v46 = vld [vmem:[%s1233_s9 + $0x100] sm:$0xff]  ;;  %v730_v37 = vpack.c.bf16 %v492_v36, %v490_v35  ;;  %v496_v42 = vld [vmem:[%s1233_s9 + $0x1f8] sm:$0xff] }
  0x39   :  { %328 = vst.msk [vmem:[#allocation2 + $0x1] sm:$0x1] %vm298_vm14, %v327_v47  ;;  %v467_v47 = vld [vmem:[%s1233_s9 + $0x110] sm:$0xff]  ;;  %v481_v27 = vld [vmem:[%s1233_s9 + $0x180] sm:$0xff]  ;;  %v734_v43 = vpack.c.bf16 %v496_v42, %v494_v41 }
  0x3a   :  { %v708_v50 = vpack.c.bf16 %v467_v47, %v465_v46  ;;  %v161_v47 = vsub.s32 0, %v921_v8 }
  0x3b   :  { %697 = vmatpush1.bf16.msra.mxu1 %v696_v32  ;;  %v485_v32 = vld [vmem:[%s1233_s9 + $0x1a0] sm:$0xff] }
  0x3c   :  { %699 = vmatprep.subr.bf16.mxu1 %v698_v33  ;;  %v487_v33 = vld [vmem:[%s1233_s9 + $0x1b0] sm:$0xff] }
  0x3d   :  { %v728_v34 = vpack.c.bf16 %v487_v33, %v485_v32 }
  0x3f   :  { %701 = vmatpush1.bf16.msra.mxu1 %v700_v38  ;;  %v489_v38 = vld [vmem:[%s1233_s9 + $0x1c0] sm:$0xff] }
  0x40   :  { %703 = vmatprep.subr.bf16.mxu1 %v702_v39  ;;  %v332_v23 = vld [vmem:[#allocation2] sm:$0x3]  ;;  %v491_v39 = vld [vmem:[%s1233_s9 + $0x1d0] sm:$0xff] }
  0x41   :  { %v732_v40 = vpack.c.bf16 %v491_v39, %v489_v38 }
  0x43   :  { %705 = vmatpush1.bf16.msra.mxu1 %v704_v44  ;;  %v493_v44 = vld [vmem:[%s1233_s9 + $0x1e0] sm:$0xff] }
  0x44   :  { %707 = vmatprep.subr.bf16.mxu1 %v706_v45  ;;  %v495_v45 = vld [vmem:[%s1233_s9 + $0x1f0] sm:$0xff] }
  0x45   :  { %v736_v46 = vpack.c.bf16 %v495_v45, %v493_v44 }
  0x47   :  { %709 = vmatpush1.bf16.msra.mxu1 %v708_v50  ;;  %v162_v50 = vrot.slane %v157_v48, %v161_v47 }
  0x48   :  { %711 = vmatprep.subr.bf16.mxu1 %v710_v51  ;;  %v166_v51 = vrot.slane %v157_v48, %v165_v49 }
  0x4b   :  { %713 = vmatpush1.bf16.msra.mxu1 %v712_v56  ;;  %v341_v56 = vld [vmem:[%s1232_s8] sm:$0x3]  ;;  %s600_s8 = sshll.u32 %s825_s6, 4  ;;  %s601_s8 = int_to_ptr.vmem [resolvable:$true] %s600_s8 }
  0x4c   :  { %715 = vmatprep.subr.bf16.mxu1 %v714_v58  ;;  %v346_v61 = vrot.slane %v341_v56, %v161_v47  ;;  %s771_s28 = scalar_lea.vmem %s601_s8, 512  ;;  %p776_p11 = scmp.lt.s32.totalorder %s601_s8, %s601_s8 }
  0x4d   :  { %p772_p10 = scmp.ne.s32.totalorder %s601_s8, %s771_s28  ;;  %p777_p12 = scmp.lt.s32.totalorder %s771_s28, %s771_s28 }
  0x4f   :  { %717 = vmatpush1.bf16.msra.mxu1 %v716_v63  ;;  %v350_v63 = vrot.slane %v341_v56, %v165_v49  ;;  %p778_p13 = por %p777_p12, %p776_p11 }
  0x50   :  { %719 = vmatprep.subr.bf16.mxu1 %v718_v0 }
  0x51   :  { %p779_p0 = pnand %p778_p13, %p772_p10 }
  0x53   :  { %721 = vmatpush1.bf16.msra.mxu1 %v720_v3 }
  0x54   :  { %723 = vmatprep.subr.bf16.mxu1 %v722_v26 }
  0xf7   :  { %v649_v5 = vpop.f32.mrb[0].mxu0 }
  0xf8   :  { %v134_v6 = vpop.f32.mrb[1].mxu0  ;;  %v140_v10 = vadd.f32 %v649_v5, %v625_v4 }
  0xf9   :  { %v135_v11 = vadd.f32 %v625_v4, %v134_v6 }
  0xfa   :  { %v146_v19 = vmul.f32 0.02, %v140_v10  ;;  %vm144_vm1 = vcmp.ge.f32.partialorder %v140_v10, 0.0 }
  0xfb   :  { %vm143_vm15 = vcmp.ge.f32.partialorder %v135_v11, 0.0  ;;  %v145_v14 = vmul.f32 0.02, %v135_v11 }
  0xfc   :  { %v148_v22 = vsel %vm144_vm1, %v140_v10, %v146_v19 }
  0xfd   :  { %v147_v20 = vsel %vm143_vm15, %v135_v11, %v145_v14 }
  0xfe   :  { %628 = vmatmul.mubr.msk.f32.vlgmr.msra.gmra.mrb[2].mxu0 %vm61_vm0, %v147_v20 }
  0xff   :  { %669 = vmatpush1.bf16.msra.mxu0 %v668_v15  ;;  %245 = vmatprep.mubr.f32.mxu0 %v824_v57 }
 0x100   :  { %671 = vmatprep.subr.bf16.mxu0 %v670_v16 }
 0x102   :  { %629 = vmatmul.mubr.msk.f32.gmra.mrb[4].mxu0 %vm61_vm0, %v148_v22 }
 0x103   :  { %673 = vmatpush1.bf16.msra.mxu0 %v672_v21  ;;  %420 = vmatprep.mubr.f32.mxu0 %v824_v57  ;;  %v483_v57 = vld [vmem:[%s1233_s9 + $0x190] sm:$0xff] }
 0x104   :  { %v724_v28 = vpack.c.bf16 %v483_v57, %v481_v27 }
 0x106   :  { %632 = vmatmul.mubr.msk.f32.vlgmr.msra.gmra.mrb[6].mxu0 %vm61_vm0, %v332_v23  ;;  %725 = vmatpush1.bf16.msra.mxu1 %v724_v28  ;;  %vm253_vm0 = vcmask 523264  }
 0x107   :  { %727 = vmatprep.subr.bf16.mxu1 %v726_v31 }
 0x10a   :  { %729 = vmatpush1.bf16.msra.mxu1 %v728_v34 }
 0x10b   :  { %731 = vmatprep.subr.bf16.mxu1 %v730_v37 }
 0x10e   :  { %733 = vmatpush1.bf16.msra.mxu1 %v732_v40 }
 0x10f   :  { %735 = vmatprep.subr.bf16.mxu1 %v734_v43 }
 0x112   :  { %737 = vmatpush1.bf16.msra.mxu1 %v736_v46 }
 0x1d1   :  { %v241_v52 = vpop.f32.mrb[2].mxu0 }
 0x1d2   :  { %v242_v53 = vadd.f32 %v241_v52, %v162_v50  ;;  %v243_v54 = vpop.f32.mrb[3].mxu0 }
 0x1d3   :  { %v244_v55 = vadd.f32 %v243_v54, %v166_v51 }
 0x1d4   :  { %252 = vst [vmem:[#allocation6] sm:$0xff] %v242_v53 }
 0x1d5   :  { %254 = vst.msk [vmem:[#allocation6 + $0x8] sm:$0xff] %vm253_vm0, %v244_v55  ;;  %v247_v58 = vpop.f32.mrb[4].mxu0 }
 0x1d6   :  { %v248_v59 = vadd.f32 %v247_v58, %v162_v50  ;;  %v249_v60 = vpop.f32.mrb[5].mxu0 }
 0x1d7   :  { %v250_v62 = vadd.f32 %v249_v60, %v166_v51 }
 0x1d8   :  { %255 = vst [vmem:[#allocation6 + $0x10] sm:$0xff] %v248_v59 }
 0x1d9   :  { %256 = vst.msk [vmem:[#allocation6 + $0x18] sm:$0xff] %vm253_vm0, %v250_v62  ;;  %v422_v0 = vpop.f32.mrb[6].mxu0 }
 0x1da   :  { %v423_v1 = vadd.f32 %v422_v0, %v346_v61  ;;  %v424_v2 = vpop.f32.mrb[7].mxu0 }
 0x1db   :  { %v425_v3 = vadd.f32 %v424_v2, %v350_v63 }
 0x1dc   :  { %v429_v4 = vmul.f32 0.02, %v423_v1  ;;  %vm427_vm3 = vcmp.ge.f32.partialorder %v423_v1, 0.0 }
 0x1dd   :  { %vm428_vm2 = vcmp.ge.f32.partialorder %v425_v3, 0.0  ;;  %v430_v5 = vmul.f32 0.02, %v425_v3 }
 0x1de   :  { %v431_v7 = vsel %vm427_vm3, %v423_v1, %v429_v4 }
 0x1df   :  { %v432_v6 = vsel %vm428_vm2, %v425_v3, %v430_v5 }
 0x1e0   :  { %573 = vmatprep.mubr.f32.mxu1 %v432_v6 }
 0x1e1   :  { %574 = vmatmul.mubr.f32.vlgmr.msra.gmra.mrb[0].mxu1 %v431_v7 }
 0x1e2   :  { %782 = shalt.err (!%p779_p0)
}
 0x1e3   :  { %s783_s1 = scalar_lea.hbm %s1235_s11, 512 }
 0x1e4   :  { %p784_p1 = scmp.ne.s32.totalorder %s1235_s11, %s783_s1  ;;  %p787_p2 = scmp.lt.u32.totalorder %s783_s1, %s1235_s11 }
 0x1e6   :  { %p789_p3 = pnand %p787_p2, %p784_p1 }
 0x1e8   :  { %792 = shalt.err (!%p789_p3)
}
 0x1e9   :  { %s826_s2 = smov 256   ;;  %s827_s16 = smov 16   ;;  %v497_v9 = vld [vmem:[%s1234_s10] sm:$0x3]  ;;  %v828_v10 = vmov 1983009808  }
 0x1ea   :  { %606 = dma.vmem_to_hbm [thread:$0]  %s601_s8, 512, %s1235_s11, [#allocation7], %s826_s2, %s826_s2, %s827_s16   ;;  %v584_v11 = vunpack.c.l.s4 %v828_v10  ;;  %v502_v12 = vrot.slane %v497_v9, %v161_v47  ;;  %v506_v13 = vrot.slane %v497_v9, %v165_v49  ;;  %vm591_vm4 = vcmask 1041408  }
 0x1eb   :  { %vm592_vm5 = vcmask 584706   ;;  %s829_s20 = smov [#allocation8]  }
 0x1ec   :  { %v585_v14 = vunpack.c.0.s8 %v584_v11  ;;  %s613_s7 = sshll.u32 %s829_s20, 4  ;;  %vm593_vm6 = vmor %vm592_vm5, %vm591_vm4  ;;  %s614_s7 = int_to_ptr.vmem [resolvable:$true] %s613_s7 }
 0x1ed   :  { %s793_s10 = scalar_lea.vmem %s614_s7, 64  ;;  %p798_p5 = scmp.lt.s32.totalorder %s614_s7, %s614_s7 }
 0x1ee   :  { %v588_v19 = vsub.s32 %v585_v14, %v921_v8  ;;  %p794_p4 = scmp.ne.s32.totalorder %s614_s7, %s793_s10  ;;  %p799_p6 = scmp.lt.s32.totalorder %s793_s10, %s793_s10 }
 0x1f0   :  { %p800_p7 = por %p799_p6, %p798_p5 }
 0x1f2   :  { %p801_p8 = pnand %p800_p7, %p794_p4 }
 0x2b4   :  { %v575_v15 = vpop.f32.mrb[0].mxu1 }
 0x2b5   :  { %v576_v16 = vadd.f32 %v575_v15, %v502_v12  ;;  %v577_v17 = vpop.f32.mrb[1].mxu1 }
 0x2b6   :  { %v578_v18 = vadd.f32 %v577_v17, %v506_v13 }
 0x2b8   :  { %v582_v20 = vcombine.low %v576_v16, %v578_v18 }
 0x2ba   :  { %v589_v21 = vrot.slane %v582_v20, %v588_v19 }
 0x2bc   :  { %594 = vst.msk [vmem:[#allocation8] sm:$0xf] %vm593_vm6, %v589_v21 }
 0x2bd   :  { %804 = shalt.err (!%p801_p8)
}
 0x2be   :  { %s805_s22 = scalar_lea.hbm %s1236_s12, 64 }
 0x2bf   :  { %p806_p9 = scmp.ne.s32.totalorder %s1236_s12, %s805_s22  ;;  %p809_p10 = scmp.lt.u32.totalorder %s805_s22, %s1236_s12 }
 0x2c1   :  { %p811_p11 = pnand %p809_p10, %p806_p9 }
 0x2c3   :  { %814 = shalt.err (!%p811_p11)
}
 0x2c4   :  { %616 = dma.vmem_to_hbm [thread:$0]  %s614_s7, 64, %s1236_s12, [#allocation9]  }
 0x2c5   :  { %817 = dma.done.wait [#allocation7], 512  }
 0x2c6   :  { %818 = vsyncadd [#allocation7], 4294966784 }
 0x2c7   :  { %819 = dma.done.wait [#allocation9], 64  }
 0x2c8   :  { %820 = vsyncadd [#allocation9], 4294967232 }
 0x2c9   :  { %623 = vsyncpa [#allocation7], 1 }
 0x2ca   :  { %624 = vsyncpa [#allocation9], 1 }

</bundles_post_ra>
